<compile_context>
chip_gen: v7x
topology: tpu7x:2x2x1
jax: 0.10.0
libtpu: 0.0.40
codegen_flags: <defaults>
</compile_context>

<pallas_src>
import jax
import jax.numpy as jnp
from jax import lax
from jax.experimental import pallas as pl
from jax.experimental.pallas import tpu as pltpu


def _round_up(x, m):
    return ((x + m - 1) // m) * m


def _vmem_cap_bytes():
    try:
        return int(pltpu.get_tpu_info().vmem_capacity_bytes)
    except Exception:
        return 64 << 20  # v7x per-TensorCore VMEM; conservative default


def _fold_bn(gamma, beta, running_mean, running_var, eps, C):
    """Inference-form BN folded into a per-channel (scale, shift)."""
    if gamma is None:
        return jnp.ones((C,), jnp.float32), jnp.zeros((C,), jnp.float32)
    scale = gamma.astype(jnp.float32) * lax.rsqrt(running_var.astype(jnp.float32) + eps)
    shift = beta.astype(jnp.float32) - running_mean.astype(jnp.float32) * scale
    return scale, shift


# --------------------------------------------------------------------------
# Path A: channels on the lane axis (C >= 64, or any stride).
# --------------------------------------------------------------------------
def _dwconv_channels_on_lanes(x_nhwc, w_kkc, shift, *, K, stride, padding, dilation,
                              relu, Ho, Wo, cap_bytes):
    N, H, W, C = x_nhwc.shape
    out_dtype = x_nhwc.dtype
    itemsize = jnp.dtype(out_dtype).itemsize

    # Channel block must be lane-dense (multiple of 128) or the full C (BlockSpec rule).
    BC = 128 if C % 128 == 0 else C
    n_cb = C // BC

    PT = padding                                  # top pad rows (leading dim, no alignment issue)
    PL = _round_up(padding, 8)                    # sublane-aligned interior column -> unmasked DMA stores
    Hp = H + 2 * padding
    Wp_s = _round_up(PL + W + padding, 8)         # multiple of 8 so sublane rolls stay tidy
    w_base = PL - padding                         # column of the kw=0 tap

    # Staged input DMA: split the HBM->VMEM slab into row chunks and interleave
    # them with the per-stage row compute (self-contained per grid step).
    S = max(1, min(4, H // 8))
    CH = -(-H // S)
    chunks = []
    c0 = 0
    while c0 < H:
        chunks.append((c0, min(CH, H - c0)))
        c0 += CH
    S = len(chunks)
    stage_rows, r_prev = [], -1
    for (cs, cn) in chunks:
        end = cs + cn
        if end >= H:
            r_hi = Ho - 1                         # bottom pad rows are pre-zeroed, so all rows are ready
        else:
            r_hi = min(Ho - 1, (padding + end - 1 - dilation * (K - 1)) // stride)
        r_hi = max(r_hi, r_prev)
        stage_rows.append((r_prev + 1, r_hi))
        r_prev = r_hi

    est = (Hp * Wp_s * BC * itemsize              # padded-input scratch (single buffer)
           + 2 * Ho * Wo * BC * itemsize          # pipelined output block
           + 2 * (K * K * BC + BC) * 4)           # folded weights + shift
    vmem_limit = int(min(max(2 * est, 16 << 20), int(0.85 * cap_bytes)))
    # TODO(synk): for very large spatial maps, halo-tile the rows instead of
    #             relying on one full-spatial scratch per (n, channel-block).

    def kernel(x_hbm, w_ref, b_ref, o_ref, pad_ref, sem):
        n = pl.program_id(0)
        cb = pl.program_id(1)
        ch0 = pl.multiple_of(cb * BC, BC)

        def start_chunk(si):
            cs, cn = chunks[si]
            cp = pltpu.make_async_copy(
                x_hbm.at[n, pl.ds(cs, cn), :, pl.ds(ch0, BC)],
                pad_ref.at[pl.ds(PT + cs, cn), pl.ds(PL, W), :],
                sem.at[si])
            cp.start()
            return cp

        pending = [None] * S
        pending[0] = start_chunk(0)
        if S > 1:
            pending[1] = start_chunk(1)

        # Zero only the pad border strips the taps actually read (not the whole scratch).
        if padding > 0:
            pad_ref[0:PT, :, :] = jnp.zeros((PT, Wp_s, BC), out_dtype)
            pad_ref[PT + H:PT + H + padding, :, :] = jnp.zeros((padding, Wp_s, BC), out_dtype)
            zc = jnp.zeros((Hp, padding, BC), out_dtype)
            pad_ref[:, PL - padding:PL, :] = zc
            pad_ref[:, PL + W:PL + W + padding, :] = zc

        # Hoisted once (BN scale already folded into the weights in the wrapper).
        w_f = w_ref[...].astype(jnp.float32)      # (K, K, BC)
        b_f = b_ref[...].astype(jnp.float32)      # (1, BC)

        def compute_row(r):
            acc = None
            for kh in range(K):
                pr = r * stride + kh * dilation                    # row in padded coords
                if stride == 1:
                    row = pad_ref[pr].astype(jnp.float32)          # (Wp_s, BC) aligned load, reused for all kw
                for kw in range(K):
                    w0 = w_base + kw * dilation
                    if stride == 1:
                        if w0 == 0:
                            patch = row[:Wo, :]
                        elif w0 % 8 == 0:
                            patch = row[w0:w0 + Wo, :]             # aligned static slice
                        else:
                            patch = pltpu.roll(row, shift=(Wp_s - w0) % Wp_s, axis=0)[:Wo, :]
                    else:
                        # strided patch read straight from VMEM (no in-register gathers)
                        patch = pad_ref[pr, pl.ds(w0, Wo, stride), :].astype(jnp.float32)
                    contrib = patch * w_f[kh, kw]
                    acc = contrib if acc is None else acc + contrib   # first tap peeled
            y = acc + b_f
            if relu:
                y = jnp.maximum(y, 0.0)
            o_ref[0, r] = y.astype(o_ref.dtype)

        for si in range(S):
            if si + 2 < S:
                pending[si + 2] = start_chunk(si + 2)   # keep a chunk DMA in flight
            pending[si].wait()
            r_lo, r_hi = stage_rows[si]
            if r_hi >= r_lo:
                @pl.loop(r_lo, r_hi + 1)
                def _rows(r):
                    compute_row(r)

    return pl.pallas_call(
        kernel,
        out_shape=jax.ShapeDtypeStruct((N, Ho, Wo, C), out_dtype),
        grid_spec=pltpu.PrefetchScalarGridSpec(
            num_scalar_prefetch=0,
            grid=(N, n_cb),
            in_specs=[
                pl.BlockSpec(memory_space=pl.ANY),                    # x stays in HBM; DMA'd manually
                pl.BlockSpec((K, K, BC), lambda n, cb: (0, 0, cb)),
                pl.BlockSpec((1, BC), lambda n, cb: (0, cb)),
            ],
            out_specs=pl.BlockSpec((1, Ho, Wo, BC), lambda n, cb: (n, 0, 0, cb)),
            scratch_shapes=[pltpu.VMEM((Hp, Wp_s, BC), out_dtype),
                            pltpu.SemaphoreType.DMA((S,))],
        ),
        compiler_params=pltpu.CompilerParams(
            dimension_semantics=("parallel", "parallel"),
            vmem_limit_bytes=vmem_limit),
    )(x_nhwc, w_kkc, shift.reshape(1, C))


# --------------------------------------------------------------------------
# Path B: small C (stride 1) — fold (W, C) onto the 128-lane axis.
# --------------------------------------------------------------------------
def _dwconv_wc_on_lanes(x_nhwc, w_kkc, shift, *, K, padding, dilation, relu,
                        Ho, Wo, cap_bytes):
    N, H, W, C = x_nhwc.shape
    out_dtype = x_nhwc.dtype
    Hp, Wp = H + 2 * padding, W + 2 * padding
    WpC, WoC = Wp * C, Wo * C
    WpC_pad = _round_up(WpC, 128)

    # TODO(synk): this small-tensor path still pads in the wrapper (one extra
    #             HBM pass over a small tensor); fold into an in-kernel DMA like
    #             the channels-on-lanes path if it ever shows up in profiles.
    xp = jnp.pad(x_nhwc, ((0, 0), (padding, padding), (padding, padding), (0, 0)))
    xf = xp.reshape(N, Hp, WpC)
    if WpC_pad > WpC:
        xf = jnp.pad(xf, ((0, 0), (0, 0), (0, WpC_pad - WpC)))

    # Per-tap lane-vector weights: entry (kh*K + kw, wo*C + c) == w[kh, kw, c].
    w_tap = jnp.tile(w_kkc.reshape(K * K, 1, C), (1, Wo, 1)).reshape(K * K, WoC)
    b_tap = jnp.tile(shift.reshape(1, 1, C), (1, Wo, 1)).reshape(1, WoC)

    est = 4 * (2 * Hp * WpC_pad + 2 * Ho * WoC + (K * K + 1) * WoC)
    vmem_limit = int(min(max(2 * est, 16 << 20), int(0.85 * cap_bytes)))

    def kernel(x_ref, w_ref, b_ref, o_ref):
        w_f = w_ref[...].astype(jnp.float32)      # (K*K, WoC), hoisted
        b_f = b_ref[...].astype(jnp.float32)      # (1, WoC)

        def do_rows(r0, nr):
            acc = None
            for kh in range(K):
                rows = x_ref[0, pl.ds(r0 + kh * dilation, nr), :].astype(jnp.float32)
                for kw in range(K):
                    sft = kw * dilation * C                 # lane shift of the fused (W,C) axis
                    patch = rows if sft == 0 else pltpu.roll(rows, shift=WpC_pad - sft, axis=1)
                    contrib = patch[:, :WoC] * w_f[kh * K + kw]
                    acc = contrib if acc is None else acc + contrib
            y = acc + b_f
            if relu:
                y = jnp.maximum(y, 0.0)
            o_ref[0, pl.ds(r0, nr), :] = y.astype(o_ref.dtype)

        n_full = Ho // 8
        tail = Ho - 8 * n_full
        if n_full > 0:
            @pl.loop(0, n_full)
            def _grp(g):
                do_rows(pl.multiple_of(g * 8, 8), 8)        # 8-row groups, aligned stores
        if tail > 0:
            do_rows(8 * n_full, tail)

    out = pl.pallas_call(
        kernel,
        out_shape=jax.ShapeDtypeStruct((N, Ho, WoC), out_dtype),
        grid_spec=pltpu.PrefetchScalarGridSpec(
            num_scalar_prefetch=0,
            grid=(N,),
            in_specs=[
                pl.BlockSpec((1, Hp, WpC_pad), lambda n: (n, 0, 0)),
                pl.BlockSpec((K * K, WoC), lambda n: (0, 0)),
                pl.BlockSpec((1, WoC), lambda n: (0, 0)),
            ],
            out_specs=pl.BlockSpec((1, Ho, WoC), lambda n: (n, 0, 0)),
        ),
        compiler_params=pltpu.CompilerParams(
            dimension_semantics=("parallel",),
            vmem_limit_bytes=vmem_limit),
    )(xf, w_tap, b_tap)
    return out.reshape(N, Ho, Wo, C)


# --------------------------------------------------------------------------
# Public wrappers
# --------------------------------------------------------------------------
def basic_sep_conv_nhwc(x_nhwc, w_c1kk, gamma, beta, running_mean, running_var, *,
                        stride=1, padding=0, dilation=1, eps=1e-5, relu=True):
    """BasicSepConv forward on an NHWC tensor (the kernels' native layout)."""
    N, H, W, C = x_nhwc.shape
    K = int(w_c1kk.shape[-1])
    stride, padding, dilation = int(stride), int(padding), int(dilation)
    Ho = (H + 2 * padding - dilation * (K - 1) - 1) // stride + 1
    Wo = (W + 2 * padding - dilation * (K - 1) - 1) // stride + 1
    assert Ho > 0 and Wo > 0

    scale, shift = _fold_bn(gamma, beta, running_mean, running_var, eps, C)
    # Depthwise weights (C,1,K,K) -> (K,K,C) with BN scale folded in; the kernels
    # then only add the per-channel shift and apply ReLU after accumulation.
    w_kkc = jnp.transpose(w_c1kk[:, 0, :, :], (1, 2, 0)).astype(jnp.float32) * scale[None, None, :]

    cap = _vmem_cap_bytes()

    if stride == 1 and C < 64:
        Hp, Wp = H + 2 * padding, W + 2 * padding
        WpC_pad = _round_up(Wp * C, 128)
        est_small = 4 * (2 * Hp * WpC_pad + 2 * Ho * Wo * C + (K * K + 1) * Wo * C)
        if est_small <= min(int(0.5 * cap), 24 << 20):
            return _dwconv_wc_on_lanes(x_nhwc, w_kkc, shift, K=K, padding=padding,
                                       dilation=dilation, relu=relu, Ho=Ho, Wo=Wo,
                                       cap_bytes=cap)
    return _dwconv_channels_on_lanes(x_nhwc, w_kkc, shift, K=K, stride=stride,
                                     padding=padding, dilation=dilation, relu=relu,
                                     Ho=Ho, Wo=Wo, cap_bytes=cap)


def basic_sep_conv(x_nchw, w_c1kk, gamma, beta, running_mean, running_var, *,
                   stride=1, padding=0, dilation=1, eps=1e-5, relu=True):
    """Drop-in NCHW forward of BasicSepConv (PyTorch interface parity).

    The kernels run in NHWC; keeping the surrounding network in NHWC makes these
    two transposes disappear entirely.
    """
    x_nhwc = jnp.transpose(x_nchw, (0, 2, 3, 1))
    out_nhwc = basic_sep_conv_nhwc(x_nhwc, w_c1kk, gamma, beta, running_mean,
                                   running_var, stride=stride, padding=padding,
                                   dilation=dilation, eps=eps, relu=relu)
    return jnp.transpose(out_nhwc, (0, 3, 1, 2))


# --------------------------------------------------------------------------
# Reference + checks
# --------------------------------------------------------------------------
def _reference(x, w, gamma, beta, mean, var, *, stride, padding, dilation,
               eps=1e-5, relu=True):
    C = x.shape[1]
    y = lax.conv_general_dilated(
        x, w, window_strides=(stride, stride),
        padding=[(padding, padding), (padding, padding)],
        rhs_dilation=(dilation, dilation),
        dimension_numbers=("NCHW", "OIHW", "NCHW"),
        feature_group_count=C)
    s = (gamma / jnp.sqrt(var + eps)).reshape(1, C, 1, 1)
    b = (beta - mean * gamma / jnp.sqrt(var + eps)).reshape(1, C, 1, 1)
    y = y * s + b
    return jnp.maximum(y, 0.0) if relu else y


def _check_case(key, *, N, C, H, W, K=3, stride=1, padding=1, dilation=1):
    k_x, k_w, k_g, k_b = jax.random.split(key, 4)
    x = jax.random.normal(k_x, (N, C, H, W), jnp.float32)
    w = jax.random.normal(k_w, (C, 1, K, K), jnp.float32) * 0.1
    gamma = 1.0 + 0.1 * jax.random.normal(k_g, (C,), jnp.float32)
    beta = 0.1 * jax.random.normal(k_b, (C,), jnp.float32)
    mean = 0.05 * jnp.sin(jnp.arange(C, dtype=jnp.float32))
    var = 1.0 + 0.1 * jnp.cos(jnp.arange(C, dtype=jnp.float32))

    out = basic_sep_conv(x, w, gamma, beta, mean, var,
                         stride=stride, padding=padding, dilation=dilation)
    out = jax.block_until_ready(out)

    ref = _reference(x, w, gamma, beta, mean, var,
                     stride=stride, padding=padding, dilation=dilation)
    assert out.shape == ref.shape, (out.shape, ref.shape)
    assert jnp.allclose(out, ref, atol=1e-4, rtol=1e-4), \
        f"mismatch at {(N, C, H, W, stride, padding, dilation)}"


if __name__ == "__main__":
    key = jax.random.PRNGKey(0)
    k1, k2, k3, k4, k5 = jax.random.split(key, 5)
    # Spec-sized demo: batch=2, channels=4, 16x16, 3x3 depthwise, stride 1, pad 1
    # -> small-C path with the fused (W*C) lane layout.
    _check_case(k1, N=2, C=4, H=16, W=16, K=3, stride=1, padding=1)
    # Lane-dense path: 256 channels -> two 128-wide channel blocks, staged DMA,
    # roll-based kw taps.
    _check_case(k2, N=1, C=256, H=40, W=40, K=3, stride=1, padding=1)
    # Stride-2 path (strided pl.ds reads from the padded scratch), odd spatial,
    # non-128 channel block.
    _check_case(k3, N=2, C=96, H=17, W=17, K=3, stride=2, padding=1)
    # Small-C path with a ragged row tail and lane padding of the fused axis.
    _check_case(k4, N=1, C=8, H=9, W=10, K=3, stride=1, padding=1)
    # Dilated depthwise conv on the channels-on-lanes path.
    _check_case(k5, N=1, C=128, H=14, W=14, K=3, stride=1, padding=2, dilation=2)
    print("KERNEL_OK")
</pallas_src>

<mosaic_0001>
module attributes {stable_mosaic.version = 11 : i64} {
  func.func @kernel(%arg0: i32, %arg1: memref<1x18x128xf32, #tpu.memory_space<vmem>>, %arg2: memref<9x64xf32, #tpu.memory_space<vmem>>, %arg3: memref<1x64xf32, #tpu.memory_space<vmem>>, %arg4: memref<1x16x64xf32, #tpu.memory_space<vmem>>) attributes {dimension_semantics = [#tpu.dimension_semantics<parallel>], iteration_bounds = array<i64: 2>, scalar_prefetch = 0 : i64, scratch_operands = 0 : i64, tpu.core_type = #tpu.core_type<tc>, window_params = [{transform_indices = @transform_0, window_bounds = array<i64: 1, 18, 128>}, {pipeline_mode = #tpu.pipeline_mode<synchronous>, transform_indices = @transform_1, window_bounds = array<i64: 9, 64>}, {pipeline_mode = #tpu.pipeline_mode<synchronous>, transform_indices = @transform_2, window_bounds = array<i64: 1, 64>}, {transform_indices = @transform_3, window_bounds = array<i64: 1, 16, 64>}]} {
    %c0 = arith.constant 0 : index
    %c0_0 = arith.constant 0 : index
    %0 = vector.load %arg2[%c0, %c0_0] : memref<9x64xf32, #tpu.memory_space<vmem>>, vector<9x64xf32>
    %c0_1 = arith.constant 0 : index
    %c0_2 = arith.constant 0 : index
    %1 = vector.load %arg3[%c0_1, %c0_2] : memref<1x64xf32, #tpu.memory_space<vmem>>, vector<1x64xf32>
    %c0_i32 = arith.constant 0 : i32
    %c2_i32 = arith.constant 2 : i32
    %2 = arith.addi %c0_i32, %c2_i32 : i32
    %c1_i32 = arith.constant 1 : i32
    scf.for %arg5 = %c0_i32 to %2 step %c1_i32  : i32 {
      %c1_i32_4 = arith.constant 1 : i32
      %3 = arith.muli %arg5, %c1_i32_4 : i32
      %c0_i32_5 = arith.constant 0 : i32
      %4 = arith.addi %c0_i32_5, %3 : i32
      %c8_i32 = arith.constant 8 : i32
      %5 = arith.muli %4, %c8_i32 : i32
      %6 = tpu.assume_multiple %5, 8 : i32
      %c0_i32_6 = arith.constant 0 : i32
      %7 = arith.addi %6, %c0_i32_6 : i32
      %c0_7 = arith.constant 0 : index
      %8 = arith.index_cast %7 : i32 to index
      %c0_8 = arith.constant 0 : index
      %9 = vector.load %arg1[%c0_7, %8, %c0_8] : memref<1x18x128xf32, #tpu.memory_space<vmem>>, vector<1x8x128xf32>
      %10 = vector.shape_cast %9 : vector<1x8x128xf32> to vector<8x128xf32>
      %11 = vector.extract_strided_slice %10 {offsets = [0, 0], sizes = [8, 64], strides = [1, 1]} : vector<8x128xf32> to vector<8x64xf32>
      %12 = vector.extract_strided_slice %0 {offsets = [0, 0], sizes = [1, 64], strides = [1, 1]} : vector<9x64xf32> to vector<1x64xf32>
      %13 = vector.shape_cast %12 : vector<1x64xf32> to vector<64xf32>
      %14 = vector.shape_cast %13 : vector<64xf32> to vector<1x64xf32>
      %15 = vector.broadcast %14 : vector<1x64xf32> to vector<8x64xf32>
      %16 = arith.mulf %11, %15 : vector<8x64xf32>
      %c124_i32 = arith.constant 124 : i32
      %17 = tpu.dynamic_rotate %10 by %c124_i32 dim 1 : vector<8x128xf32>, i32 -> vector<8x128xf32>
      %18 = vector.extract_strided_slice %17 {offsets = [0, 0], sizes = [8, 64], strides = [1, 1]} : vector<8x128xf32> to vector<8x64xf32>
      %19 = vector.extract_strided_slice %0 {offsets = [1, 0], sizes = [1, 64], strides = [1, 1]} : vector<9x64xf32> to vector<1x64xf32>
      %20 = vector.shape_cast %19 : vector<1x64xf32> to vector<64xf32>
      %21 = vector.shape_cast %20 : vector<64xf32> to vector<1x64xf32>
      %22 = vector.broadcast %21 : vector<1x64xf32> to vector<8x64xf32>
      %23 = arith.mulf %18, %22 : vector<8x64xf32>
      %24 = arith.addf %16, %23 : vector<8x64xf32>
      %c120_i32 = arith.constant 120 : i32
      %25 = tpu.dynamic_rotate %10 by %c120_i32 dim 1 : vector<8x128xf32>, i32 -> vector<8x128xf32>
      %26 = vector.extract_strided_slice %25 {offsets = [0, 0], sizes = [8, 64], strides = [1, 1]} : vector<8x128xf32> to vector<8x64xf32>
      %27 = vector.extract_strided_slice %0 {offsets = [2, 0], sizes = [1, 64], strides = [1, 1]} : vector<9x64xf32> to vector<1x64xf32>
      %28 = vector.shape_cast %27 : vector<1x64xf32> to vector<64xf32>
      %29 = vector.shape_cast %28 : vector<64xf32> to vector<1x64xf32>
      %30 = vector.broadcast %29 : vector<1x64xf32> to vector<8x64xf32>
      %31 = arith.mulf %26, %30 : vector<8x64xf32>
      %32 = arith.addf %24, %31 : vector<8x64xf32>
      %c1_i32_9 = arith.constant 1 : i32
      %33 = arith.addi %6, %c1_i32_9 : i32
      %c0_10 = arith.constant 0 : index
      %34 = arith.index_cast %33 : i32 to index
      %c0_11 = arith.constant 0 : index
      %35 = vector.load %arg1[%c0_10, %34, %c0_11] : memref<1x18x128xf32, #tpu.memory_space<vmem>>, vector<1x8x128xf32>
      %36 = vector.shape_cast %35 : vector<1x8x128xf32> to vector<8x128xf32>
      %37 = vector.extract_strided_slice %36 {offsets = [0, 0], sizes = [8, 64], strides = [1, 1]} : vector<8x128xf32> to vector<8x64xf32>
      %38 = vector.extract_strided_slice %0 {offsets = [3, 0], sizes = [1, 64], strides = [1, 1]} : vector<9x64xf32> to vector<1x64xf32>
      %39 = vector.shape_cast %38 : vector<1x64xf32> to vector<64xf32>
      %40 = vector.shape_cast %39 : vector<64xf32> to vector<1x64xf32>
      %41 = vector.broadcast %40 : vector<1x64xf32> to vector<8x64xf32>
      %42 = arith.mulf %37, %41 : vector<8x64xf32>
      %43 = arith.addf %32, %42 : vector<8x64xf32>
      %c124_i32_12 = arith.constant 124 : i32
      %44 = tpu.dynamic_rotate %36 by %c124_i32_12 dim 1 : vector<8x128xf32>, i32 -> vector<8x128xf32>
      %45 = vector.extract_strided_slice %44 {offsets = [0, 0], sizes = [8, 64], strides = [1, 1]} : vector<8x128xf32> to vector<8x64xf32>
      %46 = vector.extract_strided_slice %0 {offsets = [4, 0], sizes = [1, 64], strides = [1, 1]} : vector<9x64xf32> to vector<1x64xf32>
      %47 = vector.shape_cast %46 : vector<1x64xf32> to vector<64xf32>
      %48 = vector.shape_cast %47 : vector<64xf32> to vector<1x64xf32>
      %49 = vector.broadcast %48 : vector<1x64xf32> to vector<8x64xf32>
      %50 = arith.mulf %45, %49 : vector<8x64xf32>
      %51 = arith.addf %43, %50 : vector<8x64xf32>
      %c120_i32_13 = arith.constant 120 : i32
      %52 = tpu.dynamic_rotate %36 by %c120_i32_13 dim 1 : vector<8x128xf32>, i32 -> vector<8x128xf32>
      %53 = vector.extract_strided_slice %52 {offsets = [0, 0], sizes = [8, 64], strides = [1, 1]} : vector<8x128xf32> to vector<8x64xf32>
      %54 = vector.extract_strided_slice %0 {offsets = [5, 0], sizes = [1, 64], strides = [1, 1]} : vector<9x64xf32> to vector<1x64xf32>
      %55 = vector.shape_cast %54 : vector<1x64xf32> to vector<64xf32>
      %56 = vector.shape_cast %55 : vector<64xf32> to vector<1x64xf32>
      %57 = vector.broadcast %56 : vector<1x64xf32> to vector<8x64xf32>
      %58 = arith.mulf %53, %57 : vector<8x64xf32>
      %59 = arith.addf %51, %58 : vector<8x64xf32>
      %c2_i32_14 = arith.constant 2 : i32
      %60 = arith.addi %6, %c2_i32_14 : i32
      %c0_15 = arith.constant 0 : index
      %61 = arith.index_cast %60 : i32 to index
      %c0_16 = arith.constant 0 : index
      %62 = vector.load %arg1[%c0_15, %61, %c0_16] : memref<1x18x128xf32, #tpu.memory_space<vmem>>, vector<1x8x128xf32>
      %63 = vector.shape_cast %62 : vector<1x8x128xf32> to vector<8x128xf32>
      %64 = vector.extract_strided_slice %63 {offsets = [0, 0], sizes = [8, 64], strides = [1, 1]} : vector<8x128xf32> to vector<8x64xf32>
      %65 = vector.extract_strided_slice %0 {offsets = [6, 0], sizes = [1, 64], strides = [1, 1]} : vector<9x64xf32> to vector<1x64xf32>
      %66 = vector.shape_cast %65 : vector<1x64xf32> to vector<64xf32>
      %67 = vector.shape_cast %66 : vector<64xf32> to vector<1x64xf32>
      %68 = vector.broadcast %67 : vector<1x64xf32> to vector<8x64xf32>
      %69 = arith.mulf %64, %68 : vector<8x64xf32>
      %70 = arith.addf %59, %69 : vector<8x64xf32>
      %c124_i32_17 = arith.constant 124 : i32
      %71 = tpu.dynamic_rotate %63 by %c124_i32_17 dim 1 : vector<8x128xf32>, i32 -> vector<8x128xf32>
      %72 = vector.extract_strided_slice %71 {offsets = [0, 0], sizes = [8, 64], strides = [1, 1]} : vector<8x128xf32> to vector<8x64xf32>
      %73 = vector.extract_strided_slice %0 {offsets = [7, 0], sizes = [1, 64], strides = [1, 1]} : vector<9x64xf32> to vector<1x64xf32>
      %74 = vector.shape_cast %73 : vector<1x64xf32> to vector<64xf32>
      %75 = vector.shape_cast %74 : vector<64xf32> to vector<1x64xf32>
      %76 = vector.broadcast %75 : vector<1x64xf32> to vector<8x64xf32>
      %77 = arith.mulf %72, %76 : vector<8x64xf32>
      %78 = arith.addf %70, %77 : vector<8x64xf32>
      %c120_i32_18 = arith.constant 120 : i32
      %79 = tpu.dynamic_rotate %63 by %c120_i32_18 dim 1 : vector<8x128xf32>, i32 -> vector<8x128xf32>
      %80 = vector.extract_strided_slice %79 {offsets = [0, 0], sizes = [8, 64], strides = [1, 1]} : vector<8x128xf32> to vector<8x64xf32>
      %81 = vector.extract_strided_slice %0 {offsets = [8, 0], sizes = [1, 64], strides = [1, 1]} : vector<9x64xf32> to vector<1x64xf32>
      %82 = vector.shape_cast %81 : vector<1x64xf32> to vector<64xf32>
      %83 = vector.shape_cast %82 : vector<64xf32> to vector<1x64xf32>
      %84 = vector.broadcast %83 : vector<1x64xf32> to vector<8x64xf32>
      %85 = arith.mulf %80, %84 : vector<8x64xf32>
      %86 = arith.addf %78, %85 : vector<8x64xf32>
      %87 = vector.broadcast %1 : vector<1x64xf32> to vector<8x64xf32>
      %88 = arith.addf %86, %87 : vector<8x64xf32>
      %cst = arith.constant 0.000000e+00 : f32
      %89 = vector.broadcast %cst : f32 to vector<8x64xf32>
      %90 = arith.maximumf %88, %89 : vector<8x64xf32>
      %c0_19 = arith.constant 0 : index
      %91 = arith.index_cast %6 : i32 to index
      %c0_20 = arith.constant 0 : index
      %92 = vector.load %arg4[%c0_19, %91, %c0_20] : memref<1x16x64xf32, #tpu.memory_space<vmem>>, vector<1x8x64xf32>
      %93 = vector.shape_cast %92 : vector<1x8x64xf32> to vector<8x64xf32>
      %94 = vector.shape_cast %90 : vector<8x64xf32> to vector<1x8x64xf32>
      tpu.vector_store %arg4[%c0_19, %91, %c0_20], %94 {strides = array<i32>} : memref<1x16x64xf32, #tpu.memory_space<vmem>>, vector<1x8x64xf32>,
    }
    %c2_i32_3 = arith.constant 2 : i32
    return
  }
  func.func @transform_0(%arg0: i32) -> (i32, i32, i32) {
    %c0_i32 = arith.constant 0 : i32
    %c0_i32_0 = arith.constant 0 : i32
    %c0_i32_1 = arith.constant 0 : i32
    return %arg0, %c0_i32, %c0_i32_0 : i32, i32, i32
  }
  func.func @transform_1(%arg0: i32) -> (i32, i32) {
    %c0_i32 = arith.constant 0 : i32
    %c0_i32_0 = arith.constant 0 : i32
    %c0_i32_1 = arith.constant 0 : i32
    return %c0_i32, %c0_i32_0 : i32, i32
  }
  func.func @transform_2(%arg0: i32) -> (i32, i32) {
    %c0_i32 = arith.constant 0 : i32
    %c0_i32_0 = arith.constant 0 : i32
    %c0_i32_1 = arith.constant 0 : i32
    return %c0_i32, %c0_i32_0 : i32, i32
  }
  func.func @transform_3(%arg0: i32) -> (i32, i32, i32) {
    %c0_i32 = arith.constant 0 : i32
    %c0_i32_0 = arith.constant 0 : i32
    %c0_i32_1 = arith.constant 0 : i32
    return %arg0, %c0_i32, %c0_i32_0 : i32, i32, i32
  }
}

</mosaic_0001>

<bundles_post_ra>
// kernel: tpu_custom_call.1
= control target key start
LH: loop header
LB: loop body
LE: loop exit
PB: predicated region body
PF: predicated region fallthrough
CT: control target
= control target key end

     0   :  { %8 = vsyncpa [#allocation3], 0  ;;  %s677_s0 = inlined_call_operand.vmem [shape: f32[2,18,128], index: 0, kind: input, shape index: {}]   ;;  %s678_s1 = inlined_call_operand.vmem [shape: f32[9,64], index: 1, kind: input, shape index: {}]   ;;  %s679_s2 = inlined_call_operand.vmem [shape: f32[1,64], index: 2, kind: input, shape index: {}]   ;;  %s680_s3 = inlined_call_operand.hbm [shape: f32[2,16,64], index: 3, kind: output, shape index: {}]  }
   0x1   :  { %10 = vsyncpa [#allocation3 + $0x1], 0  ;;  %s522_s12 = smov 0   ;;  %s524_s13 = smov 0  }
   0x2   :  { %s526_s14 = smov 0   ;;  %s528_s15 = smov 0  }
   0x3 LB: > { %s543_s16 = sadd.s32 4294967295, %s491_s15   ;;  %s354_s17 = sadd.s32 4294967294, %s491_s15   ;;  %s491_s15 = sphi %s528_s15, %s686_s15   ;;  %s487_s14 = sphi %s526_s14, %s685_s14   ;;  %s483_s13 = sphi %s524_s13, %s684_s13   ;;  %s479_s12 = sphi %s522_s12, %s683_s12  }
   0x4   : > { %s547_s18 = sadd.s32 1, %s491_s15   ;;  %s91_s19 = sadd.s32 1, %s487_s14 }
   0x5   : > { %s88_s20 = ssub.s32 %s491_s15, %s547_s18  ;;  %p101_p0 = scmp.ne.s32.totalorder %s487_s14, %s483_s13 }
   0x6   : > { %p89_p1 = scmp.eq.s32.totalorder %s88_s20, 0  ;;  %p102_p2 = scmp.eq.s32.totalorder %s543_s16, 1 }
   0x7   : > { %p107_p3 = scmp.ne.s32.totalorder %s483_s13, %s479_s12  ;;  %p108_p4 = scmp.eq.s32.totalorder %s354_s17, 1 }
   0x8   : > { %s558_s21 = scalar_select %p89_p1, %s487_s14, %s91_s19  }
   0x9   : > { %p560_p5 = por %p102_p2, %p101_p0  ;;  %p564_p6 = por %p108_p4, %p107_p3 }
   0xa   : > { %p357_p7 = scmp.ge.s32.totalorder %s491_s15, 1  ;;  %p140_p8 = scmp.lt.s32.totalorder %s491_s15, 3 }
   0xc   : > { %p141_p9 = pnand %p357_p7, %p140_p8 }
   0xd   : > { %s161_s24 = sand.u32 (!%p141_p9), 1, %s483_s13   ;;  %p164_p10 = scmp.lt.s32.totalorder (!%p141_p9), %s543_s16, 1  ;;  %v575_v0 = vld [vmem:[%s678_s1] sm:$0xff] (!%p141_p9)  ;;  %v580_v1 = vld [vmem:[%s678_s1 + $0x8] ss:$0 sm:$0xff] (!%p141_p9) }
   0xe   : > { %144 = sbr.rel (%p141_p9) target bundleno = 183 (0xb7), region = 32  ;;  %s584_s29 = sshll.u32 (!%p141_p9), %s161_s24, 4  ;;  %v589_v2 = vld [vmem:[%s679_s2] ss:$0 sm:$0xff] (!%p141_p9) }
   0xf   : > { %s163_s10 = scalar_lea.vmem (!%p141_p9), [#allocation2], %s584_s29  ;;  %s598_s11 = smov (!%p141_p9), 0  }
  0x15   : > { %s165_s5 = scalar_select %p164_p10, %s543_s16, 1 }
  0x17   : > { %s373_s6 = smul.u32 24, %s165_s5 }
  0x19   : > { %s595_s9 = scalar_lea.vmem %s677_s0, %s373_s6 }
  0x1a LB: >> { %s360_s17 = sshll.u32 %s495_s11, 3  ;;  %s497_s20 = smov 124   ;;  %v181_v6 = vlaneseq  ;;  %vm261_vm0 = vcmask 523264   ;;  %s495_s11 = sphi %s598_s11, %s177_s11  }
  0x1b   : >> { %s179_s19 = scalar_lea.vmem %s595_s9, %s360_s17  ;;  %s498_s25 = smov 120  }
  0x1c   : >> { %v180_v3 = vld [vmem:[%s179_s19] sm:$0xff]  ;;  %v182_v7 = vshrl.u32 %v181_v6, 7  ;;  %s260_s26 = scalar_lea.vmem %s163_s10, %s360_s17 [#allocation2]  ;;  %s177_s11 = sadd.s32 1, %s495_s11  }
  0x1d   : >> { %v362_v4 = vld [vmem:[%s179_s19 + $0x1] sm:$0xff]  ;;  %186 = vrot.lane.b32.xlu0 %v180_v3, %s497_s20  ;;  %p174_p11 = scmp.ge.s32.totalorder %s177_s11, 2  }
  0x1e   : >> { %211 = vrot.lane.b32.xlu1 %v362_v4, %s497_s20  ;;  %v364_v5 = vld [vmem:[%s179_s19 + $0x2] sm:$0xff]  ;;  %v183_v8 = vsub.s32 0, %v182_v7  ;;  %v190_v9 = vsub.s32 1, %v182_v7  ;;  %v207_v11 = vsub.s32 3, %v182_v7  ;;  %v198_v13 = vsub.s32 2, %v182_v7  ;;  %s372_s27 = sshll.u32 (%p174_p11), %s543_s16, 8 }
  0x1f   : >> { %v215_v15 = vsub.s32 4, %v182_v7  ;;  %v223_v17 = vsub.s32 5, %v182_v7  ;;  %v232_v22 = vsub.s32 6, %v182_v7  ;;  %v240_v25 = vsub.s32 7, %v182_v7  ;;  %s628_s4 = scalar_lea.hbm (%p174_p11), %s680_s3, %s372_s27  ;;  %s277_s5 = sshll.u32 (%p174_p11), %s163_s10, 4  ;;  %s632_s5 = int_to_ptr.vmem [resolvable:$true] %s277_s5 }
  0x20   : >> { %v184_v10 = vrot.slane %v575_v0, %v183_v8  ;;  %v191_v12 = vrot.slane %v575_v0, %v190_v9  ;;  %v208_v19 = vrot.slane %v575_v0, %v207_v11  ;;  %v199_v21 = vrot.slane %v575_v0, %v198_v13  ;;  %s636_s6 = scalar_lea.sflag (%p174_p11), [#allocation3], %s161_s24  ;;  %s425_s7 = scalar_lea.vmem (%p174_p11), %s632_s5, 256 }
  0x21   : >> { %194 = vrot.lane.b32.xlu0 %v180_v3, %s498_s25  ;;  %v216_v24 = vrot.slane %v575_v0, %v215_v15  ;;  %v224_v29 = vrot.slane %v575_v0, %v223_v17  ;;  %v233_v31 = vrot.slane %v575_v0, %v232_v22  ;;  %v241_v36 = vrot.slane %v575_v0, %v240_v25  ;;  %p426_p12 = scmp.ne.s32.totalorder (%p174_p11), %s632_s5, %s425_s7  ;;  %s499_s16 = smov (%p174_p11), [#allocation2]  }
  0x22   : >> { %219 = vrot.lane.b32.xlu1 %v362_v4, %s498_s25  ;;  %v185_v18 = vmul.f32 %v184_v10, %v180_v3  ;;  %v209_v26 = vmul.f32 %v362_v4, %v208_v19  ;;  %s429_s8 = sshll.u32 (%p174_p11), %s499_s16, 4  ;;  %s430_s8 = int_to_ptr.vmem [resolvable:$false] %s429_s8 }
  0x23   : >> { %v234_v38 = vmul.f32 %v364_v5, %v233_v31  ;;  %p427_p13 = pnand (%p174_p11), %p426_p12, %p560_p5  ;;  %s431_s9 = scalar_lea.vmem (%p174_p11), %s430_s8, 512 }
  0x24   : > { %p432_p1 = scmp.lt.s32.totalorder (%p174_p11), %s632_s5, %s430_s8  ;;  %p433_p2 = scmp.lt.s32.totalorder (%p174_p11), %s431_s9, %s425_s7 }
  0x25   : >> { %236 = vrot.lane.b32.xlu0 %v364_v5, %s497_s20  ;;  %p428_p0 = pneg (%p174_p11), %p427_p13 }
  0x26   : >> { %244 = vrot.lane.b32.xlu1 %v364_v5, %s498_s25  ;;  %p434_p3 = por (%p174_p11), %p433_p2, %p432_p1 }
  0x28   : > { %p435_p4 = pnand (%p174_p11), %p434_p3, %p428_p0 }
  0x8f   : >> { %v187_v14 = vpop.permute.xlu0 %186 }
  0x90   : >> { %v212_v16 = vpop.permute.xlu1 %211  ;;  %v192_v20 = vmul.f32 %v191_v12, %v187_v14 }
  0x91   : >> { %v217_v34 = vmul.f32 %v216_v24, %v212_v16 }
  0x92   : >> { %v193_v27 = vadd.f32 %v192_v20, %v185_v18 }
  0x93   : >> { %v195_v23 = vpop.permute.xlu0 %194 }
  0x94   : >> { %v200_v28 = vmul.f32 %v199_v21, %v195_v23  ;;  %v220_v30 = vpop.permute.xlu1 %219 }
  0x95   : >> { %v225_v35 = vmul.f32 %v224_v29, %v220_v30 }
  0x96   : >> { %v201_v32 = vadd.f32 %v200_v28, %v193_v27 }
  0x97   : >> { %v237_v37 = vpop.permute.xlu0 %236 }
  0x98   : >> { %v210_v33 = vadd.f32 %v209_v26, %v201_v32  ;;  %v245_v40 = vpop.permute.xlu1 %244  ;;  %v242_v42 = vmul.f32 %v241_v36, %v237_v37 }
  0x99   : >> { %v250_v44 = vmul.f32 %v580_v1, %v245_v40 }
  0x9a   : >> { %v218_v39 = vadd.f32 %v217_v34, %v210_v33 }
  0x9c   : >> { %v226_v41 = vadd.f32 %v225_v35, %v218_v39 }
  0x9e   : >> { %v235_v43 = vadd.f32 %v234_v38, %v226_v41 }
  0xa0   : >> { %v243_v45 = vadd.f32 %v242_v42, %v235_v43 }
  0xa2   : >> { %v251_v46 = vadd.f32 %v250_v44, %v243_v45  ;;  %176 = sbr.rel (!%p174_p11) target bundleno = 26 (0x1a), region = 78 }
  0xa4   : >> { %v258_v47 = vadd.f32 %v589_v2, %v251_v46 }
  0xa6   : >> { %v259_v48 = vmax.f32 %v258_v47, 0.0 }
  0xa8   : >> { %262 = vst.msk [vmem:[%s260_s26] sm:$0xff] %vm261_vm0, %v259_v48 }
  0xa9   : > { %438 = shalt.err (!%p435_p4)
}
  0xaa   : > { %s439_s24 = scalar_lea.hbm %s628_s4, 256  ;;  %s443_s11 = scalar_lea.hbm %s680_s3, 512 }
  0xab   : > { %p440_p7 = scmp.ne.s32.totalorder %s628_s4, %s439_s24  ;;  %p444_p10 = scmp.lt.u32.totalorder %s628_s4, %s680_s3 }
  0xac   : > { %p445_p11 = scmp.lt.u32.totalorder %s443_s11, %s439_s24  ;;  %p447_p13 = scmp.lt.u32.totalorder %s439_s24, %s628_s4 }
  0xad   : > { %p441_p8 = pnand %p440_p7, %p560_p5 }
  0xae   : > { %p446_p12 = por %p445_p11, %p444_p10 }
  0xaf   : > { %p442_p9 = pneg %p441_p8 }
  0xb0   : > { %p448_p0 = por %p447_p13, %p446_p12 }
  0xb2   : > { %p449_p1 = pnand %p448_p0, %p442_p9 }
  0xb4   : > { %452 = shalt.err (!%p449_p1)
}
  0xb5   : > { %s500_s20 = smov 128   ;;  %s501_s25 = smov 8  }
  0xb6   : > { %374 = dma.vmem_to_hbm [thread:$0]  (%p560_p5), %s632_s5, 256, %s628_s4, %s636_s6, %s500_s20, %s500_s20, %s501_s25  }
  0xb7 PF: > { %p380_p2 = scmp.ge.s32.totalorder %s491_s15, 2  ;;  %s292_s26 = sand.u32 1, %s479_s12  }
  0xb8   : > { %s293_s27 = scalar_lea.sflag [#allocation3], %s292_s26 }
  0xb9   : > { %p377_p3 = pnand %p380_p2, %p564_p6 }
  0xbb   : > { %474 = dma.done.wait (!%p377_p3), %s293_s27, 256  }
  0xbc   : > { %476 = vsyncadd (!%p377_p3), %s293_s27, 4294967040  ;;  %p13_p4 = scmp.ge.s32.totalorder %s547_s18, 4   ;;  %s683_s12 = smov %s483_s13 }
  0xbd   : > { %s684_s13 = smov %s487_s14  ;;  %s685_s14 = smov %s558_s21 }
  0xbe   : > { %s686_s15 = smov %s547_s18  ;;  %15 = sbr.rel (!%p13_p4) target bundleno = 3 (0x3), region = 89 }
  0xc5   :  { %298 = vsyncpa [#allocation3], 1 }
  0xc6   :  { %300 = vsyncpa [#allocation3 + $0x1], 1 }

</bundles_post_ra>
